<compile_context>
chip_gen: v7x
topology: tpu7x:2x2x1
jax: 0.10.0
libtpu: 0.0.40
codegen_flags: <defaults>
</compile_context>

<pallas_src>
from functools import partial

import jax
import jax.numpy as jnp
from jax.experimental import pallas as pl
from jax.experimental.pallas import tpu as pltpu


def _bn_pad_kernel(scale_ref, shift_ref, x_ref, o_ref, *, pad, H, W):
    # scale/shift: (Cb, 1, 1) f32 in VMEM -> one broadcast serves the whole
    # (Cb, Hp, Wp) channel-block tile.
    s = scale_ref[...]
    b = shift_ref[...]
    interior = (x_ref[...].astype(jnp.float32) * s + b).astype(o_ref.dtype)

    if pad > 0:
        # 1) aligned, unmasked full-tile store of the pad value (== BN shift).
        o_ref[...] = jnp.broadcast_to(b, o_ref.shape).astype(o_ref.dtype)
        # 2) interior overwrite at static offset (pad, pad).
        o_ref[:, pad:pad + H, pad:pad + W] = interior
    else:
        o_ref[...] = interior


def _pick_channel_block(C, H, W, Hp, Wp, itemsize, budget_bytes=4 << 20):
    """Largest divisor of C whose double-buffered (in+out) block fits `budget`."""
    per_c = (H * W + Hp * Wp) * itemsize + 2 * 4  # + per-channel scale/shift
    max_cb = max(1, budget_bytes // (2 * per_c))  # x2: double-buffered pipeline
    cb = 1
    for d in range(1, C + 1):
        if C % d == 0 and d <= max_cb:
            cb = d
    return cb


def bn_and_pad(x, weight, bias, running_mean, running_var, *, pad_pixels, eps=1e-5):
    N, C, H, W = x.shape
    p = int(pad_pixels)
    Hp, Wp = H + 2 * p, W + 2 * p

    # Fold BN params into per-channel scale/shift (plain-JAX glue, f32).
    inv_std = jax.lax.rsqrt(running_var.astype(jnp.float32) + eps)
    scale = (weight.astype(jnp.float32) * inv_std).reshape(C, 1, 1)
    shift = (bias.astype(jnp.float32)
             - running_mean.astype(jnp.float32) * weight.astype(jnp.float32) * inv_std
             ).reshape(C, 1, 1)

    Cb = _pick_channel_block(C, H, W, Hp, Wp, x.dtype.itemsize)
    kernel = partial(_bn_pad_kernel, pad=p, H=H, W=W)

    return pl.pallas_call(
        kernel,
        out_shape=jax.ShapeDtypeStruct((N, C, Hp, Wp), x.dtype),
        grid=(N, C // Cb),
        in_specs=[
            pl.BlockSpec((Cb, 1, 1), lambda n, c: (c, 0, 0)),            # scale
            pl.BlockSpec((Cb, 1, 1), lambda n, c: (c, 0, 0)),            # shift
            pl.BlockSpec((None, Cb, H, W), lambda n, c: (n, c, 0, 0)),   # x slab
        ],
        out_specs=pl.BlockSpec((None, Cb, Hp, Wp), lambda n, c: (n, c, 0, 0)),
        compiler_params=pltpu.CompilerParams(
            dimension_semantics=("parallel", "parallel")),
    )(scale, shift, x)


if __name__ == "__main__":
    N, C, H, W = 2, 4, 16, 16
    pad_pixels = 1
    eps = 1e-5

    key = jax.random.PRNGKey(0)
    k1, k2, k3, k4, k5 = jax.random.split(key, 5)
    x = jax.random.normal(k1, (N, C, H, W), jnp.float32)
    weight = 1.0 + 0.1 * jax.random.normal(k2, (C,), jnp.float32)
    bias = 0.1 * jax.random.normal(k3, (C,), jnp.float32)
    running_mean = 0.1 * jax.random.normal(k4, (C,), jnp.float32)
    running_var = jax.random.uniform(k5, (C,), jnp.float32, minval=0.5, maxval=1.5)

    out = bn_and_pad(x, weight, bias, running_mean, running_var,
                     pad_pixels=pad_pixels, eps=eps)
    out = jax.block_until_ready(out)

    # pure-JAX reference (eval-mode BN + border fill); handles pad_pixels == 0
    scale_ref = weight / jnp.sqrt(running_var + eps)
    shift_ref = bias - running_mean * scale_ref
    Hp, Wp = H + 2 * pad_pixels, W + 2 * pad_pixels
    ref = jnp.broadcast_to(shift_ref[None, :, None, None], (N, C, Hp, Wp))
    interior = x * scale_ref[None, :, None, None] + shift_ref[None, :, None, None]
    ref = ref.at[:, :, pad_pixels:pad_pixels + H, pad_pixels:pad_pixels + W].set(interior)

    assert out.shape == (N, C, Hp, Wp)
    assert jnp.allclose(out, ref, atol=1e-5, rtol=1e-5)
    print("KERNEL_OK")
</pallas_src>

<mosaic_0001>
module attributes {stable_mosaic.version = 11 : i64} {
  func.func @_bn_pad_kernel(%arg0: i32, %arg1: i32, %arg2: memref<4x1x1xf32, #tpu.memory_space<vmem>>, %arg3: memref<4x1x1xf32, #tpu.memory_space<vmem>>, %arg4: memref<1x4x16x16xf32, #tpu.memory_space<vmem>>, %arg5: memref<1x4x18x18xf32, #tpu.memory_space<vmem>>) attributes {dimension_semantics = [#tpu.dimension_semantics<parallel>, #tpu.dimension_semantics<parallel>], iteration_bounds = array<i64: 2, 1>, scalar_prefetch = 0 : i64, scratch_operands = 0 : i64, tpu.core_type = #tpu.core_type<tc>, window_params = [{transform_indices = @transform_0, window_bounds = array<i64: 4, 1, 1>}, {transform_indices = @transform_1, window_bounds = array<i64: 4, 1, 1>}, {transform_indices = @transform_2, window_bounds = array<i64: 1, 4, 16, 16>}, {transform_indices = @transform_3, window_bounds = array<i64: 1, 4, 18, 18>}]} {
    %c0 = arith.constant 0 : index
    %c0_0 = arith.constant 0 : index
    %c0_1 = arith.constant 0 : index
    %0 = vector.load %arg2[%c0, %c0_0, %c0_1] : memref<4x1x1xf32, #tpu.memory_space<vmem>>, vector<4x1x1xf32>
    %c0_2 = arith.constant 0 : index
    %c0_3 = arith.constant 0 : index
    %c0_4 = arith.constant 0 : index
    %1 = vector.load %arg3[%c0_2, %c0_3, %c0_4] : memref<4x1x1xf32, #tpu.memory_space<vmem>>, vector<4x1x1xf32>
    %c0_5 = arith.constant 0 : index
    %c0_6 = arith.constant 0 : index
    %c0_7 = arith.constant 0 : index
    %c0_8 = arith.constant 0 : index
    %2 = vector.load %arg4[%c0_5, %c0_6, %c0_7, %c0_8] : memref<1x4x16x16xf32, #tpu.memory_space<vmem>>, vector<1x4x16x16xf32>
    %3 = vector.shape_cast %2 : vector<1x4x16x16xf32> to vector<4x16x16xf32>
    %4 = vector.broadcast %0 : vector<4x1x1xf32> to vector<4x16x16xf32>
    %5 = arith.mulf %3, %4 : vector<4x16x16xf32>
    %6 = vector.broadcast %1 : vector<4x1x1xf32> to vector<4x16x16xf32>
    %7 = arith.addf %5, %6 : vector<4x16x16xf32>
    %8 = vector.shape_cast %1 : vector<4x1x1xf32> to vector<4x1x1xf32>
    %9 = vector.broadcast %8 : vector<4x1x1xf32> to vector<4x18x18xf32>
    %c0_9 = arith.constant 0 : index
    %c0_10 = arith.constant 0 : index
    %c0_11 = arith.constant 0 : index
    %c0_12 = arith.constant 0 : index
    %10 = vector.load %arg5[%c0_9, %c0_10, %c0_11, %c0_12] : memref<1x4x18x18xf32, #tpu.memory_space<vmem>>, vector<1x4x18x18xf32>
    %11 = vector.shape_cast %10 : vector<1x4x18x18xf32> to vector<4x18x18xf32>
    %12 = vector.shape_cast %9 : vector<4x18x18xf32> to vector<1x4x18x18xf32>
    tpu.vector_store %arg5[%c0_9, %c0_10, %c0_11, %c0_12], %12 {strides = array<i32>} : memref<1x4x18x18xf32, #tpu.memory_space<vmem>>, vector<1x4x18x18xf32>,
    %c0_13 = arith.constant 0 : index
    %c0_14 = arith.constant 0 : index
    %c1 = arith.constant 1 : index
    %c1_15 = arith.constant 1 : index
    %13 = vector.load %arg5[%c0_13, %c0_14, %c1, %c1_15] : memref<1x4x18x18xf32, #tpu.memory_space<vmem>>, vector<1x4x16x16xf32>
    %14 = vector.shape_cast %13 : vector<1x4x16x16xf32> to vector<4x16x16xf32>
    %15 = vector.shape_cast %7 : vector<4x16x16xf32> to vector<1x4x16x16xf32>
    tpu.vector_store %arg5[%c0_13, %c0_14, %c1, %c1_15], %15 {strides = array<i32>} : memref<1x4x18x18xf32, #tpu.memory_space<vmem>>, vector<1x4x16x16xf32>,
    return
  }
  func.func @transform_0(%arg0: i32, %arg1: i32) -> (i32, i32, i32) {
    %c0_i32 = arith.constant 0 : i32
    %c0_i32_0 = arith.constant 0 : i32
    %c0_i32_1 = arith.constant 0 : i32
    return %arg1, %c0_i32, %c0_i32_0 : i32, i32, i32
  }
  func.func @transform_1(%arg0: i32, %arg1: i32) -> (i32, i32, i32) {
    %c0_i32 = arith.constant 0 : i32
    %c0_i32_0 = arith.constant 0 : i32
    %c0_i32_1 = arith.constant 0 : i32
    return %arg1, %c0_i32, %c0_i32_0 : i32, i32, i32
  }
  func.func @transform_2(%arg0: i32, %arg1: i32) -> (i32, i32, i32, i32) {
    %c0_i32 = arith.constant 0 : i32
    %c0_i32_0 = arith.constant 0 : i32
    %c0_i32_1 = arith.constant 0 : i32
    return %arg0, %arg1, %c0_i32, %c0_i32_0 : i32, i32, i32, i32
  }
  func.func @transform_3(%arg0: i32, %arg1: i32) -> (i32, i32, i32, i32) {
    %c0_i32 = arith.constant 0 : i32
    %c0_i32_0 = arith.constant 0 : i32
    %c0_i32_1 = arith.constant 0 : i32
    return %arg0, %arg1, %c0_i32, %c0_i32_0 : i32, i32, i32, i32
  }
}

</mosaic_0001>

<bundles_post_ra>
// kernel: tpu_custom_call.1
= control target key start
LH: loop header
LB: loop body
LE: loop exit
PB: predicated region body
PF: predicated region fallthrough
CT: control target
= control target key end

     0   :  { %8 = vsyncpa [#allocation3], 0  ;;  %s936_s0 = inlined_call_operand.vmem [shape: f32[4,1,1], index: 0, kind: input, shape index: {}]   ;;  %s937_s1 = inlined_call_operand.vmem [shape: f32[4,1,1], index: 1, kind: input, shape index: {}]   ;;  %s938_s2 = inlined_call_operand.hbm [shape: f32[2,4,16,16], index: 2, kind: input, shape index: {}]   ;;  %s939_s3 = inlined_call_operand.vmem [shape: f32[2,4,18,18], index: 3, kind: output, shape index: {}]  }
   0x1   :  { %10 = vsyncpa [#allocation3 + $0x1], 0  ;;  %s736_s12 = smov 0   ;;  %s738_s13 = smov 0  }
   0x2   :  { %s740_s14 = smov 0   ;;  %s742_s15 = smov 0  }
   0x3   :  { %s744_s16 = smov 0   ;;  %s746_s17 = smov 0  }
   0x4 LB: > { %s544_s18 = sadd.s32 4294967295, %s709_s17   ;;  %s28_s19 = sadd.s32 1, %s705_s16  ;;  %s709_s17 = sphi %s746_s17, %s16_s17   ;;  %s705_s16 = sphi %s744_s16, %s947_s16   ;;  %s701_s15 = sphi %s742_s15, %s946_s15   ;;  %s697_s14 = sphi %s740_s14, %s945_s14   ;;  %s693_s13 = sphi %s738_s13, %s944_s13   ;;  %s689_s12 = sphi %s736_s12, %s943_s12  }
   0x5   : > { %p30_p0 = scmp.ge.s32.totalorder %s28_s19, 2  ;;  %s89_s20 = sadd.s32 1, %s697_s14 }
   0x6   : > { %p96_p1 = scmp.ne.s32.totalorder %s697_s14, %s693_s13  ;;  %p97_p2 = scmp.eq.s32.totalorder %s709_s17, 0 }
   0x7   : > { %s949_s19 = smov (%p30_p0, %s28_s19), 0  ;;  %p102_p4 = scmp.ne.s32.totalorder %s693_s13, %s689_s12 }
   0x8   : > { %p772_p3 = por %p97_p2, %p96_p1  ;;  %s84_s22 = ssub.s32 %s705_s16, %s949_s19 }
   0x9   : > { %p103_p5 = scmp.eq.s32.totalorder %s544_s18, 0  ;;  %p87_p6 = scmp.eq.s32.totalorder %s84_s22, 0 }
   0xa   : > { %p574_p8 = scmp.lt.s32.totalorder %s709_s17, 2  ;;  %s170_s25 = sand.u32 1, %s697_s14  }
   0xb   : > { %p779_p7 = por %p103_p5, %p102_p4  ;;  %s566_s26 = sshll.u32 %s705_s16, 10 }
   0xc   : > { %s785_s24 = scalar_select %p87_p6, %s697_s14, %s89_s20  }
   0xd   : > { %s550_s27 = sshll.u32 %s170_s25, 6  ;;  %s792_s30 = scalar_lea.hbm %s938_s2, %s566_s26 }
   0xe   : > { %s174_s4 = scalar_lea.vmem [#allocation2], %s550_s27  ;;  %p796_p9 = pnand %p574_p8, %p772_p3 }
   0xf   : > { %s184_s5 = sshll.u32 %s174_s4, 4  ;;  %s802_s7 = scalar_lea.sflag [#allocation3], %s170_s25  ;;  %s800_s5 = int_to_ptr.vmem [resolvable:$true] %s184_s5 }
  0x10   : > { %s629_s8 = scalar_lea.hbm %s792_s30, 1024  ;;  %p631_p11 = pneg %p796_p9 }
  0x11   : > { %p630_p10 = scmp.ne.s32.totalorder %s792_s30, %s629_s8  ;;  %s634_s11 = scalar_lea.hbm %s938_s2, 2048 }
  0x12   : > { %p635_p0 = scmp.lt.u32.totalorder %s792_s30, %s938_s2  ;;  %p636_p1 = scmp.lt.u32.totalorder %s634_s11, %s629_s8 }
  0x13   : > { %p632_p12 = pnand %p631_p11, %p630_p10  ;;  %p638_p3 = scmp.lt.u32.totalorder %s629_s8, %s792_s30 }
  0x14   : > { %p637_p2 = por %p636_p1, %p635_p0 }
  0x15   : > { %p633_p13 = pneg %p632_p12 }
  0x16   : > { %p639_p4 = por %p638_p3, %p637_p2 }
  0x18   : > { %p640_p5 = pnand %p639_p4, %p633_p13 }
  0x1a   : > { %643 = shalt.err (!%p640_p5)
}
  0x1b   : > { %s644_s20 = scalar_lea.vmem %s800_s5, 1024  ;;  %s711_s21 = smov [#allocation2]  }
  0x1c   : > { %p645_p6 = scmp.ne.s32.totalorder %s800_s5, %s644_s20  ;;  %s649_s22 = sshll.u32 %s711_s21, 4  ;;  %s650_s22 = int_to_ptr.vmem [resolvable:$false] %s649_s22 }
  0x1d   : > { %s651_s25 = scalar_lea.vmem %s650_s22, 2048  ;;  %p652_p12 = scmp.lt.s32.totalorder %s800_s5, %s650_s22 }
  0x1e   : > { %p647_p8 = pnand %p645_p6, %p631_p11  ;;  %p653_p0 = scmp.lt.s32.totalorder %s651_s25, %s644_s20 }
  0x20   : > { %p648_p10 = pneg %p647_p8  ;;  %p654_p1 = por %p653_p0, %p652_p12 }
  0x22   : > { %p655_p2 = pnand %p654_p1, %p648_p10 }
  0x24   : > { %658 = shalt.err (!%p655_p2)
}
  0x25   : > { %s712_s26 = smov 128   ;;  %s713_s27 = smov 8  }
  0x26   : > { %573 = dma.hbm_to_vmem [thread:$0]  (!%p796_p9), %s792_s30, 1024, %s800_s5, %s802_s7, %s712_s26, %s712_s26, %s713_s27  }
  0x27   : > { %p553_p11 = scmp.ge.s32.totalorder %s709_s17, 1  ;;  %p192_p13 = scmp.lt.s32.totalorder %s709_s17, 3 }
  0x29   : > { %p193_p3 = pnand %p553_p11, %p192_p13 }
  0x2a   : > { %s198_s28 = sand.u32 (!%p193_p3), 1, %s693_s13  }
  0x2b   : > { %196 = sbr.rel (%p193_p3) target bundleno = 319 (0x13f), region = 32  ;;  %s554_s29 = sshll.u32 (!%p193_p3), %s198_s28, 6 }
  0x2c   : > { %s199_s4 = scalar_lea.sflag (!%p193_p3), [#allocation3], %s198_s28  ;;  %s833_s8 = scalar_lea.vmem (!%p193_p3), [#allocation2], %s554_s29 }
  0x32   : > { %684 = dma.done.wait (%p779_p7), %s199_s4, 1024  }
  0x33   : > { %686 = vsyncadd (%p779_p7), %s199_s4, 4294966272  ;;  %v714_v0 = vmov 0   ;;  %v558_v1 = vld [vmem:[%s936_s0 + $0x2] ss:$0 sm:$0xff]  ;;  %v556_v2 = vld [vmem:[%s936_s0] ss:$0 sm:$0xff] }
  0x34   : > { %628 = vset.pattern.permute.xlu1 %v714_v0  ;;  %627 = vset.pattern.permute.xlu0 %v714_v0  ;;  %v559_v3 = vld [vmem:[%s936_s0 + $0x3] ss:$0 sm:$0xff]  ;;  %v557_v4 = vld [vmem:[%s936_s0 + $0x1] ss:$0 sm:$0xff]  ;;  %v560_v6 = vld [vmem:[%s937_s1] ss:$0 sm:$0xff] }
  0x35   : > { %305 = vperm.xlu1 %628, %v558_v1   ;;  %297 = vperm.xlu0 %627, %v556_v2   ;;  %v561_v5 = vld [vmem:[%s937_s1 + $0x1] ss:$0 sm:$0xff]  ;;  %v563_v7 = vld [vmem:[%s937_s1 + $0x3] ss:$0 sm:$0xff]  ;;  %v562_v8 = vld [vmem:[%s937_s1 + $0x2] ss:$0 sm:$0xff] }
  0x36   : > { %p250_p7 = scmp.lt.s32.totalorder %s701_s15, 1  ;;  %v268_v11 = vld [vmem:[%s833_s8] sm:$0xff]  ;;  %v269_v12 = vld [vmem:[%s833_s8 + $0x8] sm:$0xff]  ;;  %vm364_vm0 = vcmask 146432   ;;  %vm367_vm1 = vcmask 140288   ;;  %v270_v17 = vld [vmem:[%s833_s8 + $0x10] sm:$0xff] }
  0x37   : > { %v271_v18 = vld [vmem:[%s833_s8 + $0x18] sm:$0xff]  ;;  %v272_v25 = vld [vmem:[%s833_s8 + $0x20] sm:$0xff]  ;;  %v273_v26 = vld [vmem:[%s833_s8 + $0x28] sm:$0xff]  ;;  %vm410_vm2 = vcmask 138248  }
  0x38   : > { %s951_s15 = smov (!%p250_p7, %s701_s15), 1  ;;  %v274_v33 = vld [vmem:[%s833_s8 + $0x30] sm:$0xff]  ;;  %v275_v34 = vld [vmem:[%s833_s8 + $0x38] sm:$0xff] }
  0x39   : > { %309 = vperm.xlu1 %628, %v559_v3   ;;  %301 = vperm.xlu0 %627, %v557_v4   ;;  %s567_s28 = smul.u32 96, %s951_s15  ;;  %s715_s15 = smov 1  }
  0x3b   : > { %s870_s30 = scalar_lea.vmem %s939_s3, %s567_s28 }
  0x3d   : > { %345 = vperm.xlu1 %628, %v561_v5   ;;  %341 = vperm.xlu0 %627, %v560_v6  }
  0x41   : > { %353 = vperm.xlu1 %628, %v563_v7   ;;  %349 = vperm.xlu0 %627, %v562_v8  }
  0xb4   : > { %v306_v9 = vpop.permute.xlu1 %305  ;;  %v298_v10 = vpop.permute.xlu0 %297 }
  0xb5   : > { %v312_v15 = vmul.f32 %v298_v10, %v268_v11  ;;  %v313_v16 = vmul.f32 %v298_v10, %v269_v12  ;;  %v316_v31 = vmul.f32 %v306_v9, %v272_v25  ;;  %v317_v32 = vmul.f32 %v306_v9, %v273_v26 }
  0xb8   : > { %v310_v13 = vpop.permute.xlu1 %309  ;;  %v302_v14 = vpop.permute.xlu0 %301 }
  0xb9   : > { %v314_v23 = vmul.f32 %v302_v14, %v270_v17  ;;  %v315_v24 = vmul.f32 %v302_v14, %v271_v18  ;;  %v318_v37 = vmul.f32 %v310_v13, %v274_v33  ;;  %v319_v38 = vmul.f32 %v310_v13, %v275_v34 }
  0xbc   : > { %v346_v19 = vpop.permute.xlu1 %345  ;;  %v342_v20 = vpop.permute.xlu0 %341 }
  0xbd   : > { %369 = vst.msk [vmem:[%s870_s30 + $0x18] sm:$0xff] %vm364_vm0, %v346_v19  ;;  %370 = vst.msk [vmem:[%s870_s30 + $0x20] sm:$0xff] %vm364_vm0, %v346_v19  ;;  %v357_v21 = vadd.f32 %v342_v20, %v313_v16  ;;  %v356_v22 = vadd.f32 %v342_v20, %v312_v15  ;;  %v359_v29 = vadd.f32 %v346_v19, %v315_v24 }
  0xbe   : > { %371 = vst.msk [vmem:[%s870_s30 + $0x28] sm:$0x3] %vm367_vm1, %v346_v19  ;;  %368 = vst.msk [vmem:[%s870_s30 + $0x10] sm:$0x3] %vm367_vm1, %v342_v20  ;;  %v358_v30 = vadd.f32 %v346_v19, %v314_v23 }
  0xbf   : > { %365 = vst.msk [vmem:[%s870_s30] sm:$0xff] %vm364_vm0, %v342_v20  ;;  %366 = vst.msk [vmem:[%s870_s30 + $0x8] sm:$0xff] %vm364_vm0, %v342_v20  ;;  %388 = vrot.lane.b32.xlu1 %v357_v21, %s715_s15  ;;  %386 = vrot.lane.b32.xlu0 %v356_v22, %s715_s15 }
  0xc0   : > { %v354_v27 = vpop.permute.xlu1 %353  ;;  %v350_v28 = vpop.permute.xlu0 %349 }
  0xc1   : > { %375 = vst.msk [vmem:[%s870_s30 + $0x48] sm:$0xff] %vm364_vm0, %v354_v27  ;;  %376 = vst.msk [vmem:[%s870_s30 + $0x50] sm:$0xff] %vm364_vm0, %v354_v27  ;;  %v361_v35 = vadd.f32 %v350_v28, %v317_v32  ;;  %v360_v36 = vadd.f32 %v350_v28, %v316_v31  ;;  %v363_v39 = vadd.f32 %v354_v27, %v319_v38 }
  0xc2   : > { %377 = vst.msk [vmem:[%s870_s30 + $0x58] sm:$0x3] %vm367_vm1, %v354_v27  ;;  %374 = vst.msk [vmem:[%s870_s30 + $0x40] sm:$0x3] %vm367_vm1, %v350_v28  ;;  %v362_v40 = vadd.f32 %v354_v27, %v318_v37 }
  0xc3   : > { %372 = vst.msk [vmem:[%s870_s30 + $0x30] sm:$0xff] %vm364_vm0, %v350_v28  ;;  %373 = vst.msk [vmem:[%s870_s30 + $0x38] sm:$0xff] %vm364_vm0, %v350_v28  ;;  %392 = vrot.lane.b32.xlu1 %v359_v29, %s715_s15  ;;  %390 = vrot.lane.b32.xlu0 %v358_v30, %s715_s15 }
  0xc7   : > { %396 = vrot.lane.b32.xlu1 %v361_v35, %s715_s15  ;;  %394 = vrot.lane.b32.xlu0 %v360_v36, %s715_s15 }
  0xcb   : > { %400 = vrot.lane.b32.xlu1 %v363_v39, %s715_s15  ;;  %398 = vrot.lane.b32.xlu0 %v362_v40, %s715_s15 }
 0x131   : > { %v389_v41 = vpop.permute.xlu1 %388  ;;  %v387_v42 = vpop.permute.xlu0 %386 }
 0x132   : > { %412 = vst.msk [vmem:[%s870_s30 + $0x9] sm:$0xff] %vm410_vm2, %v389_v41  ;;  %411 = vst.msk [vmem:[%s870_s30 + $0x1] sm:$0xff] %vm410_vm2, %v387_v42 }
 0x135   : > { %v393_v43 = vpop.permute.xlu1 %392  ;;  %v391_v44 = vpop.permute.xlu0 %390 }
 0x136   : > { %414 = vst.msk [vmem:[%s870_s30 + $0x21] sm:$0xff] %vm410_vm2, %v393_v43  ;;  %413 = vst.msk [vmem:[%s870_s30 + $0x19] sm:$0xff] %vm410_vm2, %v391_v44 }
 0x139   : > { %v397_v45 = vpop.permute.xlu1 %396  ;;  %v395_v46 = vpop.permute.xlu0 %394 }
 0x13a   : > { %416 = vst.msk [vmem:[%s870_s30 + $0x39] sm:$0xff] %vm410_vm2, %v397_v45  ;;  %415 = vst.msk [vmem:[%s870_s30 + $0x31] sm:$0xff] %vm410_vm2, %v395_v46 }
 0x13d   : > { %v401_v47 = vpop.permute.xlu1 %400  ;;  %v399_v48 = vpop.permute.xlu0 %398 }
 0x13e   : > { %418 = vst.msk [vmem:[%s870_s30 + $0x51] sm:$0xff] %vm410_vm2, %v401_v47  ;;  %417 = vst.msk [vmem:[%s870_s30 + $0x49] sm:$0xff] %vm410_vm2, %v399_v48 }
 0x13f PF: > { %s16_s17 = sadd.s32 1, %s709_s17   ;;  %s943_s12 = smov %s693_s13 }
 0x140   : > { %p13_p9 = scmp.ge.s32.totalorder %s16_s17, 4   ;;  %s944_s13 = smov %s697_s14 }
 0x141   : > { %s945_s14 = smov %s785_s24  ;;  %s946_s15 = smov %s705_s16 }
 0x142   : > { %s947_s16 = smov %s949_s19  ;;  %15 = sbr.rel (!%p13_p9) target bundleno = 4 (0x4), region = 78 }
 0x149   :  { %451 = vsyncpa [#allocation3], 1 }
 0x14a   :  { %453 = vsyncpa [#allocation3 + $0x1], 1 }

</bundles_post_ra>
